<compile_context>
chip_gen: v5e
topology: v5e:2x2
jax: 0.10.0
libtpu: 0.0.40
codegen_flags: <defaults>
</compile_context>

<pallas_src>
import functools
import numpy as np
import jax
import jax.numpy as jnp
from jax import lax
from jax.experimental import pallas as pl
from jax.experimental.pallas import tpu as pltpu

# Module hyper-parameters: MobiusFlow(D=3, K=4, condition=0, Nh=16, num_hidden_layers=3)
D = 3
K = 4
NH = 16
OUT_DIM = 4 * K          # = 16
NUM_HIDDEN_LAYERS = 3
PI = float(np.pi)
TWO_PI = 2.0 * float(np.pi)

_STEP_US = 0.35          # per-grid-step pipeline overhead
_STRIP_US = 0.25         # approx work per 1024-element strip (elementwise chain)


def _recip(x, refine=False):
    """EUP approximate reciprocal, optionally one Newton step (rel err ~1e-7)."""
    r = pl.reciprocal(x, approx=True)
    if refine:
        r = r * (2.0 - x * r)
    return r


# --------------------------------------------------------------------------
# Kernel A: conditioner MLP, channels-first (batch on lanes) on the MXU.
# Block is (·, S*1024); an inner rolled loop works on 1024-lane chunks to keep
# vreg pressure low while amortising grid-step overhead.
# --------------------------------------------------------------------------
def _cond_mlp_kernel(y_ref, w0_ref, b0_ref, w1_ref, b1_ref, w2_ref, b2_ref,
                     w3_ref, b3_ref, cond_ref, *, strips):
    @pl.loop(0, strips)
    def _(c):
        cl = pl.ds(pl.multiple_of(c * 1024, 128), 1024)
        h = jnp.dot(w0_ref[...], y_ref[:, cl],
                    preferred_element_type=jnp.float32) + b0_ref[...]
        h = jnp.maximum(h, 0.0)
        h = jnp.dot(w1_ref[...], h, preferred_element_type=jnp.float32) + b1_ref[...]
        h = jnp.maximum(h, 0.0)
        h = jnp.dot(w2_ref[...], h, preferred_element_type=jnp.float32) + b2_ref[...]
        h = jnp.maximum(h, 0.0)
        cond_ref[:, cl] = (jnp.dot(w3_ref[...], h, preferred_element_type=jnp.float32)
                           + b3_ref[...])


# --------------------------------------------------------------------------
# Kernel B: post-MLP elementwise / transcendental chain, batch-dense layout.
# Every per-k / per-component stream is a full (8,128) vreg; a rolled loop over
# 1024-element strips bounds the live set below 64 vregs (no spills).
# --------------------------------------------------------------------------
def _mobius_kernel(x_ref, y_ref, cond_ref, tx_ref, tz_ref, ldj_ref,
                   *, strips, tz_tx_first):
    @pl.loop(0, strips)
    def _(si):
        sl = pl.ds(pl.multiple_of(si * 8, 8), 8)

        xs = x_ref[:, sl, :]            # (3, 8, 128)
        ys = y_ref[:, sl, :]            # (3, 8, 128)
        cnd = cond_ref[:, sl, :]        # (16, 8, 128)

        x0, x1, x2 = xs[0], xs[1], xs[2]
        y0, y1, y2 = ys[0], ys[1], ys[2]

        weights_raw = cnd[0:K]          # (K, 8, 128)
        # Final-layer rows were permuted in the wrapper so the w components are
        # grouped by spatial dim d (matches torch's reshape(-1, K, D)).
        wx = cnd[K:2 * K]               # w[:, :, 0]
        wy = cnd[2 * K:3 * K]           # w[:, :, 1]
        wz = cnd[3 * K:4 * K]           # w[:, :, 2]

        # w <- (I - y y^T) w   (tangent-plane projection)
        ydw = y0 * wx + y1 * wy + y2 * wz
        wx = wx - y0 * ydw
        wy = wy - y1 * ydw
        wz = wz - y2 * ydw

        # r = -x / ||x||
        rinv = lax.rsqrt(x0 * x0 + x1 * x1 + x2 * x2)
        r0, r1, r2 = -x0 * rinv, -x1 * rinv, -x2 * rinv

        # v = cross(y, r) / ||.||
        v0 = y1 * r2 - y2 * r1
        v1 = y2 * r0 - y0 * r2
        v2 = y0 * r1 - y1 * r0
        vinv = lax.rsqrt(v0 * v0 + v1 * v1 + v2 * v2)
        v0, v1, v2 = v0 * vinv, v1 * vinv, v2 * vinv

        # normalized softplus weights (torch softplus: beta=1, threshold=20)
        weights = jnp.where(weights_raw > 20.0, weights_raw,
                            jnp.log1p(jnp.exp(weights_raw)))
        weights = weights * _recip(jnp.sum(weights, axis=0), refine=True)

        # w <- 0.7 / (1 + ||w||) * w ; reuse wn2 * shrink^2 for ||w||^2 post-shrink
        wn2 = wx * wx + wy * wy + wz * wz
        shrink = 0.7 * pl.reciprocal(1.0 + jnp.sqrt(wn2), approx=True)
        wx, wy, wz = wx * shrink, wy * shrink, wz * shrink
        w2 = wn2 * shrink * shrink

        # Mobius map h(z) and mixture angle
        zwx, zwy, zwz = x0 - wx, x1 - wy, x2 - wz
        zwn2 = zwx * zwx + zwy * zwy + zwz * zwz
        coef = (1.0 - w2) * _recip(zwn2, refine=True)     # feeds ldj -> refined
        hx = coef * zwx - wx
        hy = coef * zwy - wy
        hz = coef * zwz - wz

        hv = hx * v0 + hy * v1 + hz * v2
        hr = hx * r0 + hy * r1 + hz * r2
        ang = jnp.arctan2(hv, hr)
        ang = jnp.where(ang >= 0.0, ang, ang + TWO_PI)
        t = jnp.sum(weights * ang, axis=0)                 # (8, 128)
        ct = jnp.cos(t)
        # t in [0, 2pi): derive sin from cos (saves one trig polynomial)
        st = jnp.where(t <= PI, 1.0, -1.0) * jnp.sqrt(jnp.maximum(1.0 - ct * ct, 0.0))

        tx0 = r0 * ct + v0 * st
        tx1 = r1 * ct + v1 * st
        tx2 = r2 * ct + v2 * st

        # log-det-Jacobian: ||dh_dtheta_k|| = coef_k exactly
        #   (u_k unit, |dz| = |-sin(th) r + cos(th) v| = 1, Householder preserves norms)
        dtx = jnp.sum(weights * coef, axis=0)
        ldj_ref[sl, :] = jnp.log(dtx)

        # tz = cross(tx, y) or cross(y, tx) depending on permute, then normalize
        if tz_tx_first:
            a0, a1, a2 = tx0, tx1, tx2
            c0, c1, c2 = y0, y1, y2
        else:
            a0, a1, a2 = y0, y1, y2
            c0, c1, c2 = tx0, tx1, tx2
        tz0 = a1 * c2 - a2 * c1
        tz1 = a2 * c0 - a0 * c2
        tz2 = a0 * c1 - a1 * c0
        tzinv = lax.rsqrt(tz0 * tz0 + tz1 * tz1 + tz2 * tz2)

        # dense (8,128)-aligned stores; leading-dim stack is vreg grouping only
        tx_ref[:, sl, :] = jnp.stack([tx0, tx1, tx2], axis=0)
        tz_ref[:, sl, :] = jnp.stack([tz0 * tzinv, tz1 * tzinv, tz2 * tzinv], axis=0)


def _choose_block(n):
    """Choose strips-per-block S (strip = 1024 elems = 8 sublanes x 128 lanes).
    Cost model: per-core grid steps on a 2-TensorCore chip (v7x) times
    (step overhead + padded strip work) — amortises the ~0.35us/step overhead,
    keeps padding low, and prefers even step counts so both cores stay busy."""
    m = -(-n // 1024)                       # strips of real data
    best = None
    for s in (16, 8, 4, 2, 1):
        steps = -(-m // s)
        per_core_steps = -(-steps // 2)     # v7x shards the 'parallel' axis over 2 TCs
        cost = per_core_steps * (_STEP_US + s * _STRIP_US)
        if best is None or cost < best[0] - 1e-9:
            best = (cost, s, steps)
    _, s, steps = best
    return s, steps


def mobius_flow_forward(rotation, params, permute=(0, 1, 2)):
    """rotation: (N, 3, 3) float32; params: list of (W (out,in), b (out,)) for the MLP."""
    assert rotation.ndim == 3 and rotation.shape[1:] == (3, 3)
    n = rotation.shape[0]
    s, steps = _choose_block(n)
    blk = s * 1024
    np_tot = steps * blk

    # pad the batch with identity rotations (valid, NaN-free inputs)
    n_pad = np_tot - n
    if n_pad:
        pad = jnp.broadcast_to(jnp.eye(3, dtype=rotation.dtype), (n_pad, 3, 3))
        rot_p = jnp.concatenate([rotation, pad], axis=0)
    else:
        rot_p = rotation

    x2d = rot_p[..., permute[0]].T.astype(jnp.float32)   # (3, Np) channels-first
    y2d = rot_p[..., permute[1]].T.astype(jnp.float32)   # (3, Np)

    (w0, b0), (w1, b1), (w2, b2), (w3, b3) = params
    # permute the final layer rows so the w components are grouped by spatial dim
    perm = jnp.asarray(list(range(K)) + [K + k * 3 + d for d in range(3) for k in range(K)])
    w3p, b3p = w3[perm], b3[perm]
    col = lambda b: b.reshape(-1, 1).astype(jnp.float32)

    # ----- kernel A: conditioner MLP (channels-first, MXU) -----
    cond = pl.pallas_call(
        functools.partial(_cond_mlp_kernel, strips=s),
        grid=(steps,),
        in_specs=[
            pl.BlockSpec((3, blk), lambda i: (0, i)),
            pl.BlockSpec((NH, D), lambda i: (0, 0)),
            pl.BlockSpec((NH, 1), lambda i: (0, 0)),
            pl.BlockSpec((NH, NH), lambda i: (0, 0)),
            pl.BlockSpec((NH, 1), lambda i: (0, 0)),
            pl.BlockSpec((NH, NH), lambda i: (0, 0)),
            pl.BlockSpec((NH, 1), lambda i: (0, 0)),
            pl.BlockSpec((OUT_DIM, NH), lambda i: (0, 0)),
            pl.BlockSpec((OUT_DIM, 1), lambda i: (0, 0)),
        ],
        out_specs=pl.BlockSpec((OUT_DIM, blk), lambda i: (0, i)),
        out_shape=jax.ShapeDtypeStruct((OUT_DIM, np_tot), jnp.float32),
        compiler_params=pltpu.CompilerParams(dimension_semantics=("parallel",)),
    )(y2d, w0.astype(jnp.float32), col(b0), w1.astype(jnp.float32), col(b1),
      w2.astype(jnp.float32), col(b2), w3p.astype(jnp.float32), col(b3p))

    # ----- free row-major reshapes: (C, Np) -> (C, Np/128, 128); the HBM<->VMEM
    # DMA of the second call does the lane->sublane relayout implicitly. -----
    nrow = np_tot // 128
    x3 = x2d.reshape(3, nrow, 128)
    y3 = y2d.reshape(3, nrow, 128)
    cond3 = cond.reshape(OUT_DIM, nrow, 128)

    data3 = lambda c: pl.BlockSpec((c, 8 * s, 128), lambda i: (0, i, 0))

    tx3, tz3, ldj2 = pl.pallas_call(
        functools.partial(
            _mobius_kernel, strips=s,
            tz_tx_first=(permute[1] - permute[0] in (1, -2))),
        grid=(steps,),
        in_specs=[data3(3), data3(3), data3(OUT_DIM)],
        out_specs=[data3(3), data3(3),
                   pl.BlockSpec((8 * s, 128), lambda i: (i, 0))],
        out_shape=[
            jax.ShapeDtypeStruct((3, nrow, 128), jnp.float32),
            jax.ShapeDtypeStruct((3, nrow, 128), jnp.float32),
            jax.ShapeDtypeStruct((nrow, 128), jnp.float32),
        ],
        compiler_params=pltpu.CompilerParams(dimension_semantics=("parallel",)),
    )(x3, y3, cond3)

    tx = tx3.reshape(3, np_tot).T[:n]
    tz = tz3.reshape(3, np_tot).T[:n]
    ldj = ldj2.reshape(np_tot)[:n]

    y = rot_p[..., permute[1]][:n]
    cols = [None, None, None]
    cols[permute[0]] = tx
    cols[permute[1]] = y
    cols[permute[2]] = tz
    trotation = jnp.stack(cols, axis=-1)
    return trotation, ldj


def reference_forward(rotation, params, permute=(0, 1, 2)):
    """Pure-JAX mirror of MobiusFlow.forward (torch semantics, long LDJ path)."""
    x = rotation[..., permute[0]]
    y = rotation[..., permute[1]]
    h = y
    for i, (W, b) in enumerate(params):
        h = h @ W.T + b
        if i < len(params) - 1:
            h = jnp.maximum(h, 0.0)
    conditions = h
    weights = conditions[:, :K]
    w = conditions[:, K:].reshape(-1, K, D)
    I = jnp.eye(D, dtype=rotation.dtype)
    proj = I[None] - jnp.einsum('ni,nj->nij', y, y)
    w = jnp.einsum('nij,nkj->nki', proj, w)
    r = -x
    r = r / jnp.linalg.norm(r, axis=-1, keepdims=True)
    v = jnp.cross(y, r)
    v = v / jnp.linalg.norm(v, axis=-1, keepdims=True)
    weights = jnp.where(weights > 20.0, weights, jnp.log1p(jnp.exp(weights)))
    weights = weights / weights.sum(-1, keepdims=True)
    w = 0.7 / (1.0 + jnp.linalg.norm(w, axis=-1, keepdims=True)) * w

    z = x
    wn = jnp.linalg.norm(w, axis=-1, keepdims=True)
    zw = z[:, None, :] - w
    zwn_k = jnp.linalg.norm(zw, axis=-1, keepdims=True)
    h_z = (1.0 - wn ** 2) / zwn_k ** 2 * zw - w
    radians = jnp.arctan2(jnp.einsum('nki,ni->nk', h_z, v),
                          jnp.einsum('nki,ni->nk', h_z, r))
    ang = jnp.where(radians >= 0, radians, radians + 2 * jnp.pi)
    t = jnp.sum(weights * ang, axis=1, keepdims=True)
    tx = r * jnp.cos(t) + v * jnp.sin(t)

    zwn = jnp.linalg.norm(zw, axis=-1)
    zwu = zw / zwn[..., None]
    theta = jnp.arctan2(jnp.einsum('ni,ni->n', x, v),
                        jnp.einsum('ni,ni->n', x, r)).reshape(-1, 1)
    dz = -jnp.sin(theta) * r + jnp.cos(theta) * v
    dh_dz = ((1.0 - jnp.linalg.norm(w, axis=-1) ** 2)[..., None, None]
             * (I[None, None] - 2.0 * jnp.einsum('nki,nkj->nkij', zwu, zwu))
             / zwn[..., None, None] ** 2)
    dh_dtheta = jnp.einsum('nkpq,nq->nkp', dh_dz, dz)
    dtx = jnp.sum(jnp.linalg.norm(dh_dtheta, axis=-1) * weights, axis=1)
    ldj = jnp.log(dtx)

    if permute[1] - permute[0] == 1 or permute[1] - permute[0] == -2:
        tz = jnp.cross(tx, y)
    else:
        tz = jnp.cross(y, tx)
    tz = tz / jnp.linalg.norm(tz, axis=-1, keepdims=True)
    cols = [None, None, None]
    cols[permute[0]] = tx
    cols[permute[1]] = y
    cols[permute[2]] = tz
    return jnp.stack(cols, axis=-1), ldj


if __name__ == "__main__":
    key = jax.random.PRNGKey(0)
    k_rot, k_param = jax.random.split(key)

    # Deterministic parameter init for the conditioner MLP.
    # TODO(synk): flow.condition.ConditionalTransform source not provided — assumed a
    # ReLU MLP: Linear(D, Nh) + (num_hidden_layers-1) hidden Linear(Nh, Nh) + Linear(Nh, 4K).
    dims = [D] + [NH] * NUM_HIDDEN_LAYERS + [OUT_DIM]
    params = []
    pkeys = jax.random.split(k_param, len(dims) - 1)
    for i, kk in enumerate(pkeys):
        kw, kb = jax.random.split(kk)
        W = jax.random.normal(kw, (dims[i + 1], dims[i]), jnp.float32) / jnp.sqrt(dims[i])
        b = 0.1 * jax.random.normal(kb, (dims[i + 1],), jnp.float32)
        params.append((W, b))

    permute = (0, 1, 2)
    # N=8: single strip / single grid step.  N=2500: 2 grid steps x 2 strips
    # (exercises the strip loop, multi-step 'parallel' grid and padding).
    for N in (8, 2500):
        A = jax.random.normal(jax.random.fold_in(k_rot, N), (N, 3, 3), jnp.float32)
        rotation, _ = jnp.linalg.qr(A)
        rotation = rotation.astype(jnp.float32)

        trot, ldj = mobius_flow_forward(rotation, params, permute)
        trot, ldj = jax.block_until_ready((trot, ldj))

        trot_ref, ldj_ref = reference_forward(rotation, params, permute)
        np.testing.assert_allclose(np.asarray(trot), np.asarray(trot_ref),
                                   rtol=1e-2, atol=1e-2)
        np.testing.assert_allclose(np.asarray(ldj), np.asarray(ldj_ref),
                                   rtol=1e-2, atol=1e-2)
    print("KERNEL_OK")
</pallas_src>

<mosaic_0001>
module attributes {stable_mosaic.version = 11 : i64} {
  func.func @_cond_mlp_kernel(%arg0: i32, %arg1: memref<3x1024xf32, #tpu.memory_space<vmem>>, %arg2: memref<16x3xf32, #tpu.memory_space<vmem>>, %arg3: memref<16x1xf32, #tpu.memory_space<vmem>>, %arg4: memref<16x16xf32, #tpu.memory_space<vmem>>, %arg5: memref<16x1xf32, #tpu.memory_space<vmem>>, %arg6: memref<16x16xf32, #tpu.memory_space<vmem>>, %arg7: memref<16x1xf32, #tpu.memory_space<vmem>>, %arg8: memref<16x16xf32, #tpu.memory_space<vmem>>, %arg9: memref<16x1xf32, #tpu.memory_space<vmem>>, %arg10: memref<16x1024xf32, #tpu.memory_space<vmem>>) attributes {dimension_semantics = [#tpu.dimension_semantics<parallel>], iteration_bounds = array<i64: 1>, scalar_prefetch = 0 : i64, scratch_operands = 0 : i64, tpu.core_type = #tpu.core_type<tc>, window_params = [{transform_indices = @transform_0, window_bounds = array<i64: 3, 1024>}, {pipeline_mode = #tpu.pipeline_mode<synchronous>, transform_indices = @transform_1, window_bounds = array<i64: 16, 3>}, {pipeline_mode = #tpu.pipeline_mode<synchronous>, transform_indices = @transform_2, window_bounds = array<i64: 16, 1>}, {pipeline_mode = #tpu.pipeline_mode<synchronous>, transform_indices = @transform_3, window_bounds = array<i64: 16, 16>}, {pipeline_mode = #tpu.pipeline_mode<synchronous>, transform_indices = @transform_4, window_bounds = array<i64: 16, 1>}, {pipeline_mode = #tpu.pipeline_mode<synchronous>, transform_indices = @transform_5, window_bounds = array<i64: 16, 16>}, {pipeline_mode = #tpu.pipeline_mode<synchronous>, transform_indices = @transform_6, window_bounds = array<i64: 16, 1>}, {pipeline_mode = #tpu.pipeline_mode<synchronous>, transform_indices = @transform_7, window_bounds = array<i64: 16, 16>}, {pipeline_mode = #tpu.pipeline_mode<synchronous>, transform_indices = @transform_8, window_bounds = array<i64: 16, 1>}, {transform_indices = @transform_9, window_bounds = array<i64: 16, 1024>}]} {
    %c0_i32 = arith.constant 0 : i32
    %c1_i32 = arith.constant 1 : i32
    %0 = arith.muli %c0_i32, %c1_i32 : i32
    %c0_i32_0 = arith.constant 0 : i32
    %1 = arith.addi %c0_i32_0, %0 : i32
    %c1024_i32 = arith.constant 1024 : i32
    %2 = arith.muli %1, %c1024_i32 : i32
    %3 = tpu.assume_multiple %2, 128 : i32
    %c0 = arith.constant 0 : index
    %c0_1 = arith.constant 0 : index
    %4 = vector.load %arg2[%c0, %c0_1] : memref<16x3xf32, #tpu.memory_space<vmem>>, vector<16x3xf32>
    %c0_2 = arith.constant 0 : index
    %5 = arith.index_cast %3 : i32 to index
    %6 = vector.load %arg1[%c0_2, %5] : memref<3x1024xf32, #tpu.memory_space<vmem>>, vector<3x1024xf32>
    %cst = arith.constant dense<0.000000e+00> : vector<16x1024xf32>
    %7 = tpu.matmul %4, %6, %cst {dimension_numbers = #tpu.dot_dimension_numbers<[1], [0], [0], [1], [0, 0, 1, 1], [], []>} : vector<16x3xf32>, vector<3x1024xf32>, vector<16x1024xf32> -> vector<16x1024xf32>
    %c0_3 = arith.constant 0 : index
    %c0_4 = arith.constant 0 : index
    %8 = vector.load %arg3[%c0_3, %c0_4] : memref<16x1xf32, #tpu.memory_space<vmem>>, vector<16x1xf32>
    %9 = vector.broadcast %8 : vector<16x1xf32> to vector<16x1024xf32>
    %10 = arith.addf %7, %9 : vector<16x1024xf32>
    %cst_5 = arith.constant 0.000000e+00 : f32
    %11 = vector.broadcast %cst_5 : f32 to vector<16x1024xf32>
    %12 = arith.maximumf %10, %11 : vector<16x1024xf32>
    %c0_6 = arith.constant 0 : index
    %c0_7 = arith.constant 0 : index
    %13 = vector.load %arg4[%c0_6, %c0_7] : memref<16x16xf32, #tpu.memory_space<vmem>>, vector<16x16xf32>
    %cst_8 = arith.constant dense<0.000000e+00> : vector<16x1024xf32>
    %14 = tpu.matmul %13, %12, %cst_8 {dimension_numbers = #tpu.dot_dimension_numbers<[1], [0], [0], [1], [0, 0, 1, 1], [], []>} : vector<16x16xf32>, vector<16x1024xf32>, vector<16x1024xf32> -> vector<16x1024xf32>
    %c0_9 = arith.constant 0 : index
    %c0_10 = arith.constant 0 : index
    %15 = vector.load %arg5[%c0_9, %c0_10] : memref<16x1xf32, #tpu.memory_space<vmem>>, vector<16x1xf32>
    %16 = vector.broadcast %15 : vector<16x1xf32> to vector<16x1024xf32>
    %17 = arith.addf %14, %16 : vector<16x1024xf32>
    %cst_11 = arith.constant 0.000000e+00 : f32
    %18 = vector.broadcast %cst_11 : f32 to vector<16x1024xf32>
    %19 = arith.maximumf %17, %18 : vector<16x1024xf32>
    %c0_12 = arith.constant 0 : index
    %c0_13 = arith.constant 0 : index
    %20 = vector.load %arg6[%c0_12, %c0_13] : memref<16x16xf32, #tpu.memory_space<vmem>>, vector<16x16xf32>
    %cst_14 = arith.constant dense<0.000000e+00> : vector<16x1024xf32>
    %21 = tpu.matmul %20, %19, %cst_14 {dimension_numbers = #tpu.dot_dimension_numbers<[1], [0], [0], [1], [0, 0, 1, 1], [], []>} : vector<16x16xf32>, vector<16x1024xf32>, vector<16x1024xf32> -> vector<16x1024xf32>
    %c0_15 = arith.constant 0 : index
    %c0_16 = arith.constant 0 : index
    %22 = vector.load %arg7[%c0_15, %c0_16] : memref<16x1xf32, #tpu.memory_space<vmem>>, vector<16x1xf32>
    %23 = vector.broadcast %22 : vector<16x1xf32> to vector<16x1024xf32>
    %24 = arith.addf %21, %23 : vector<16x1024xf32>
    %cst_17 = arith.constant 0.000000e+00 : f32
    %25 = vector.broadcast %cst_17 : f32 to vector<16x1024xf32>
    %26 = arith.maximumf %24, %25 : vector<16x1024xf32>
    %c0_18 = arith.constant 0 : index
    %c0_19 = arith.constant 0 : index
    %27 = vector.load %arg8[%c0_18, %c0_19] : memref<16x16xf32, #tpu.memory_space<vmem>>, vector<16x16xf32>
    %cst_20 = arith.constant dense<0.000000e+00> : vector<16x1024xf32>
    %28 = tpu.matmul %27, %26, %cst_20 {dimension_numbers = #tpu.dot_dimension_numbers<[1], [0], [0], [1], [0, 0, 1, 1], [], []>} : vector<16x16xf32>, vector<16x1024xf32>, vector<16x1024xf32> -> vector<16x1024xf32>
    %c0_21 = arith.constant 0 : index
    %c0_22 = arith.constant 0 : index
    %29 = vector.load %arg9[%c0_21, %c0_22] : memref<16x1xf32, #tpu.memory_space<vmem>>, vector<16x1xf32>
    %30 = vector.broadcast %29 : vector<16x1xf32> to vector<16x1024xf32>
    %31 = arith.addf %28, %30 : vector<16x1024xf32>
    %c0_23 = arith.constant 0 : index
    %32 = arith.index_cast %3 : i32 to index
    %33 = vector.load %arg10[%c0_23, %32] : memref<16x1024xf32, #tpu.memory_space<vmem>>, vector<16x1024xf32>
    tpu.vector_store %arg10[%c0_23, %32], %31 {strides = array<i32>} : memref<16x1024xf32, #tpu.memory_space<vmem>>, vector<16x1024xf32>,
    %c1_i32_24 = arith.constant 1 : i32
    return
  }
  func.func @transform_0(%arg0: i32) -> (i32, i32) {
    %c0_i32 = arith.constant 0 : i32
    %c0_i32_0 = arith.constant 0 : i32
    return %c0_i32, %arg0 : i32, i32
  }
  func.func @transform_1(%arg0: i32) -> (i32, i32) {
    %c0_i32 = arith.constant 0 : i32
    %c0_i32_0 = arith.constant 0 : i32
    %c0_i32_1 = arith.constant 0 : i32
    return %c0_i32, %c0_i32_0 : i32, i32
  }
  func.func @transform_2(%arg0: i32) -> (i32, i32) {
    %c0_i32 = arith.constant 0 : i32
    %c0_i32_0 = arith.constant 0 : i32
    %c0_i32_1 = arith.constant 0 : i32
    return %c0_i32, %c0_i32_0 : i32, i32
  }
  func.func @transform_3(%arg0: i32) -> (i32, i32) {
    %c0_i32 = arith.constant 0 : i32
    %c0_i32_0 = arith.constant 0 : i32
    %c0_i32_1 = arith.constant 0 : i32
    return %c0_i32, %c0_i32_0 : i32, i32
  }
  func.func @transform_4(%arg0: i32) -> (i32, i32) {
    %c0_i32 = arith.constant 0 : i32
    %c0_i32_0 = arith.constant 0 : i32
    %c0_i32_1 = arith.constant 0 : i32
    return %c0_i32, %c0_i32_0 : i32, i32
  }
  func.func @transform_5(%arg0: i32) -> (i32, i32) {
    %c0_i32 = arith.constant 0 : i32
    %c0_i32_0 = arith.constant 0 : i32
    %c0_i32_1 = arith.constant 0 : i32
    return %c0_i32, %c0_i32_0 : i32, i32
  }
  func.func @transform_6(%arg0: i32) -> (i32, i32) {
    %c0_i32 = arith.constant 0 : i32
    %c0_i32_0 = arith.constant 0 : i32
    %c0_i32_1 = arith.constant 0 : i32
    return %c0_i32, %c0_i32_0 : i32, i32
  }
  func.func @transform_7(%arg0: i32) -> (i32, i32) {
    %c0_i32 = arith.constant 0 : i32
    %c0_i32_0 = arith.constant 0 : i32
    %c0_i32_1 = arith.constant 0 : i32
    return %c0_i32, %c0_i32_0 : i32, i32
  }
  func.func @transform_8(%arg0: i32) -> (i32, i32) {
    %c0_i32 = arith.constant 0 : i32
    %c0_i32_0 = arith.constant 0 : i32
    %c0_i32_1 = arith.constant 0 : i32
    return %c0_i32, %c0_i32_0 : i32, i32
  }
  func.func @transform_9(%arg0: i32) -> (i32, i32) {
    %c0_i32 = arith.constant 0 : i32
    %c0_i32_0 = arith.constant 0 : i32
    return %c0_i32, %arg0 : i32, i32
  }
}

</mosaic_0001>

<bundles_post_ra>
// kernel: tpu_custom_call.1
= control target key start
LH: loop header
LB: loop body
LE: loop exit
PB: predicated region body
PF: predicated region fallthrough
CT: control target
= control target key end

     0   :  { %v1078_v3 = vmov 0   ;;  %s1347_s0 = inlined_call_operand.vmem [shape: f32[3,1024], index: 0, kind: input, shape index: {}]   ;;  %s1348_s1 = inlined_call_operand.vmem [shape: f32[16,3], index: 1, kind: input, shape index: {}]   ;;  %s1349_s2 = inlined_call_operand.vmem [shape: f32[16,1], index: 2, kind: input, shape index: {}]   ;;  %s1350_s3 = inlined_call_operand.vmem [shape: f32[16,16], index: 3, kind: input, shape index: {}]   ;;  %s1351_s4 = inlined_call_operand.vmem [shape: f32[16,1], index: 4, kind: input, shape index: {}]   ;;  %s1352_s5 = inlined_call_operand.vmem [shape: f32[16,16], index: 5, kind: input, shape index: {}]   ;;  %s1353_s6 = inlined_call_operand.vmem [shape: f32[16,1], index: 6, kind: input, shape index: {}]   ;;  %s1354_s7 = inlined_call_operand.vmem [shape: f32[16,16], index: 7, kind: input, shape index: {}]   ;;  %s1355_s8 = inlined_call_operand.vmem [shape: f32[16,1], index: 8, kind: input, shape index: {}]   ;;  %s1356_s9 = inlined_call_operand.hbm [shape: f32[16,1024], index: 9, kind: output, shape index: {}]  }
   0x1   :  { %v35_v0 = vld [vmem:[%s1347_s0] sm:$0x77]  ;;  %v36_v1 = vld [vmem:[%s1347_s0 + $0x8] sm:$0x77]  ;;  %1049 = vset.pattern.permute.xlu0 %v1078_v3  ;;  %v38_v4 = vld [vmem:[%s1347_s0 + $0x18] sm:$0x77]  ;;  %1050 = vset.pattern.permute.xlu1 %v1078_v3 }
   0x2   :  { %55 = vst [vmem:[#allocation1] ss:$2 sm:$0xff] %v35_v0  ;;  %v40_v2 = vld [vmem:[%s1349_s2 + $0x8] sm:$0xff]  ;;  %v37_v5 = vld [vmem:[%s1347_s0 + $0x10] sm:$0x77]  ;;  %1051 = vset.pattern.permute.xlu2 %v1078_v3 }
   0x3   :  { %57 = vst [vmem:[#allocation1 + $0x10] ss:$2 sm:$0xff] %v36_v1  ;;  %48 = vperm.xlu0 %1049, %v40_v2  }
   0x4   :  { %61 = vst [vmem:[#allocation1 + $0x30] ss:$2 sm:$0xff] %v38_v4 }
   0x5   :  { %14 = vsyncpa [#allocation3], 0  ;;  %59 = vst [vmem:[#allocation1 + $0x20] ss:$2 sm:$0xff] %v37_v5  ;;  %vm77_vm0 = vcmask 1042432   ;;  %v33_v6 = vld [vmem:[%s1348_s1] sm:$0xff] }
   0x6   :  { %vm70_vm1 = vcmask 23552   ;;  %v39_v11 = vld [vmem:[%s1349_s2] sm:$0xff]  ;;  %v34_v16 = vld [vmem:[%s1348_s1 + $0x8] sm:$0xff]  ;;  %vm308_vm2 = vcmask 130048   ;;  %s961_s2 = sshll.u32 %s1356_s9, 4  ;;  %s1080_s22 = smov 1024   ;;  %s962_s2 = int_to_ptr.hbm [resolvable:$true] %s961_s2 }
   0x7   :  { %v737_v17 = vld [vmem:[%s1355_s8] sm:$0xff]  ;;  %v297_v18 = vld [vmem:[%s1351_s4 + $0x8] sm:$0xff]  ;;  %s1081_s23 = smov 64  }
   0x8   :  { %305 = vperm.xlu1 %1050, %v297_v18   ;;  %v296_v22 = vld [vmem:[%s1351_s4] sm:$0xff]  ;;  %v738_v32 = vld [vmem:[%s1355_s8 + $0x8] sm:$0xff] }
   0x9   :  { %v62_v7 = vld.sshfl [vmem:[#allocation1] sm:$0xff pattern:$0x75316420]  ;;  %v63_v8 = vld.sshfl [vmem:[#allocation1 + $0x8] sm:$0xff pattern:$0x75316420] }
   0xa   :  { %973 = vmatpush.msk.msra.mxu0 %vm77_vm0, %v62_v7  ;;  %976 = vmatpush.msk.msra.mxu1 %vm77_vm0, %v63_v8  ;;  %v64_v9 = vld.sshfl [vmem:[#allocation1 + $0x10] sm:$0xff pattern:$0x75316420]  ;;  %v65_v10 = vld.sshfl [vmem:[#allocation1 + $0x18] sm:$0xff pattern:$0x75316420] }
   0xb   :  { %979 = vmatpush.msk.msra.mxu2 %vm77_vm0, %v64_v9  ;;  %982 = vmatpush.msk.msra.mxu3 %vm77_vm0, %v65_v10  ;;  %v68_v12 = vld.sshfl [vmem:[#allocation1 + $0x30] sm:$0xff pattern:$0x75316420]  ;;  %v69_v13 = vld.sshfl [vmem:[#allocation1 + $0x38] sm:$0xff pattern:$0x75316420] }
   0xc   :  { %974 = vmatmul.msk.f32.vlgmr.msra.gmra.mxu0 %vm70_vm1, %v33_v6  ;;  %977 = vmatmul.msk.f32.vlgmr.msra.gmra.mxu1 %vm70_vm1, %v33_v6  ;;  %v66_v14 = vld.sshfl [vmem:[#allocation1 + $0x20] sm:$0xff pattern:$0x75316420]  ;;  %v67_v15 = vld.sshfl [vmem:[#allocation1 + $0x28] sm:$0xff pattern:$0x75316420] }
   0xd   :  { %980 = vmatmul.msk.f32.vlgmr.msra.gmra.mxu2 %vm70_vm1, %v33_v6  ;;  %983 = vmatmul.msk.f32.vlgmr.msra.gmra.mxu3 %vm70_vm1, %v33_v6  ;;  %v294_v37 = vld [vmem:[%s1350_s3] sm:$0xff]  ;;  %v295_v50 = vld [vmem:[%s1350_s3 + $0x8] sm:$0xff] }
   0xe   :  { %43 = vperm.xlu0 %1049, %v39_v11   ;;  %991 = vmatpush.msk.msrb.mxu2 %vm77_vm0, %v68_v12 }
   0xf   :  { %994 = vmatpush.msk.msrb.mxu3 %vm77_vm0, %v69_v13  ;;  %985 = vmatpush.msk.msrb.mxu0 %vm77_vm0, %v66_v14 }
  0x10   :  { %988 = vmatpush.msk.msrb.mxu1 %vm77_vm0, %v67_v15  ;;  %300 = vperm.xlu1 %1050, %v296_v22  }
  0x14   :  { %975 = vmatmul.msk.f32.gmra.mxu0 %vm70_vm1, %v34_v16  ;;  %978 = vmatmul.msk.f32.gmra.mxu1 %vm70_vm1, %v34_v16 }
  0x15   :  { %981 = vmatmul.msk.f32.gmra.mxu2 %vm70_vm1, %v34_v16  ;;  %984 = vmatmul.msk.f32.gmra.mxu3 %vm70_vm1, %v34_v16 }
  0x16   :  { %741 = vperm.xlu0 %1049, %v737_v17  }
  0x18   :  { %746 = vperm.xlu1 %1050, %v738_v32   ;;  %v518_v32 = vld [vmem:[%s1353_s6 + $0x8] sm:$0xff] }
  0x19   :  { %526 = vperm.xlu2 %1051, %v518_v32  }
  0x1c   :  { %986 = vmatmul.msk.f32.vlgmr.msrb.gmra.mxu0 %vm70_vm1, %v33_v6  ;;  %989 = vmatmul.msk.f32.vlgmr.msrb.gmra.mxu1 %vm70_vm1, %v33_v6 }
  0x1d   :  { %992 = vmatmul.msk.f32.vlgmr.msrb.gmra.mxu2 %vm70_vm1, %v33_v6  ;;  %995 = vmatmul.msk.f32.vlgmr.msrb.gmra.mxu3 %vm70_vm1, %v33_v6 }
  0x24   :  { %987 = vmatmul.msk.f32.gmra.mxu0 %vm70_vm1, %v34_v16  ;;  %990 = vmatmul.msk.f32.gmra.mxu1 %vm70_vm1, %v34_v16 }
  0x25   :  { %993 = vmatmul.msk.f32.gmra.mxu2 %vm70_vm1, %v34_v16  ;;  %996 = vmatmul.msk.f32.gmra.mxu3 %vm70_vm1, %v34_v16 }
  0x75   :  { %v1186_v19 = vpop.permute.xlu0 %48 }
  0x7a   :  { %v1234_v9 = vpop.permute.xlu1 %305 }
  0x80   :  { %v1191_v23 = vpop.permute.xlu0 %43 }
  0x82   :  { %v1236_v12 = vpop.permute.xlu1 %300 }
  0x89   :  { %v111_v20 = vpop.f32.mrf.mxu0  ;;  %v134_v21 = vpop.f32.mrf.mxu1 }
  0x8a   :  { %v112_v28 = vadd.f32 %v111_v20, %v1191_v23  ;;  %v135_v29 = vadd.f32 %v134_v21, %v1191_v23 }
  0x8c   :  { %v278_v35 = vmax.f32 %v112_v28, 0.0  ;;  %v279_v36 = vmax.f32 %v135_v29, 0.0 }
  0x90   :  { %v157_v24 = vpop.f32.mrf.mxu2  ;;  %v180_v25 = vpop.f32.mrf.mxu3 }
  0x91   :  { %v114_v26 = vpop.f32.mrf.mxu0  ;;  %v137_v27 = vpop.f32.mrf.mxu1  ;;  %v158_v38 = vadd.f32 %v157_v24, %v1191_v23  ;;  %v181_v41 = vadd.f32 %v180_v25, %v1191_v23  ;;  %v1245_v25 = vld [vmem:[%s1352_s5] sm:$0xff] }
  0x92   :  { %v115_v30 = vadd.f32 %v114_v26, %v1186_v19  ;;  %v138_v31 = vadd.f32 %v137_v27, %v1186_v19 }
  0x93   :  { %v280_v48 = vmax.f32 %v158_v38, 0.0  ;;  %v281_v49 = vmax.f32 %v181_v41, 0.0 }
  0x94   :  { %v286_v33 = vmax.f32 %v115_v30, 0.0  ;;  %v287_v34 = vmax.f32 %v138_v31, 0.0  ;;  %v516_v31 = vld [vmem:[%s1352_s5 + $0x8] sm:$0xff] }
  0x96   :  { %329 = vmatpush.msra.mxu0 %v286_v33  ;;  %352 = vmatpush.msra.mxu1 %v287_v34 }
  0x98   :  { %v160_v39 = vpop.f32.mrf.mxu2  ;;  %v183_v40 = vpop.f32.mrf.mxu3  ;;  %330 = vmatpush.msra.mxu0 %v278_v35  ;;  %353 = vmatpush.msra.mxu1 %v279_v36 }
  0x99   :  { %v161_v42 = vadd.f32 %v160_v39, %v1186_v19  ;;  %v184_v43 = vadd.f32 %v183_v40, %v1186_v19  ;;  %v203_v44 = vpop.f32.mrf.mxu0  ;;  %v226_v45 = vpop.f32.mrf.mxu1  ;;  %997 = vmatmul.msk.f32.vlgmr.msra.gmra.mxu0 %vm308_vm2, %v294_v37  ;;  %999 = vmatmul.msk.f32.vlgmr.msra.gmra.mxu1 %vm308_vm2, %v294_v37 }
  0x9a   :  { %v204_v57 = vadd.f32 %v203_v44, %v1191_v23  ;;  %v227_v58 = vadd.f32 %v226_v45, %v1191_v23 }
  0x9b   :  { %v288_v46 = vmax.f32 %v161_v42, 0.0  ;;  %v289_v47 = vmax.f32 %v184_v43, 0.0 }
  0x9c   :  { %v282_v61 = vmax.f32 %v204_v57, 0.0  ;;  %v283_v62 = vmax.f32 %v227_v58, 0.0 }
  0x9d   :  { %375 = vmatpush.msra.mxu2 %v288_v46  ;;  %398 = vmatpush.msra.mxu3 %v289_v47 }
  0x9f   :  { %376 = vmatpush.msra.mxu2 %v280_v48  ;;  %399 = vmatpush.msra.mxu3 %v281_v49  ;;  %v517_v48 = vld [vmem:[%s1353_s6] sm:$0xff] }
  0xa0   :  { %v249_v51 = vpop.f32.mrf.mxu2  ;;  %v272_v52 = vpop.f32.mrf.mxu3  ;;  %1001 = vmatmul.msk.f32.vlgmr.msra.gmra.mxu2 %vm308_vm2, %v294_v37  ;;  %1003 = vmatmul.msk.f32.vlgmr.msra.gmra.mxu3 %vm308_vm2, %v294_v37 }
  0xa1   :  { %v206_v53 = vpop.f32.mrf.mxu0  ;;  %v229_v54 = vpop.f32.mrf.mxu1  ;;  %998 = vmatmul.msk.f32.gmra.mxu0 %vm308_vm2, %v295_v50  ;;  %1000 = vmatmul.msk.f32.gmra.mxu1 %vm308_vm2, %v295_v50  ;;  %v250_v63 = vadd.f32 %v249_v51, %v1191_v23  ;;  %v273_v2 = vadd.f32 %v272_v52, %v1191_v23 }
  0xa2   :  { %v207_v55 = vadd.f32 %v206_v53, %v1186_v19  ;;  %v230_v56 = vadd.f32 %v229_v54, %v1186_v19  ;;  %521 = vperm.xlu2 %1051, %v517_v48  }
  0xa3   :  { %v284_v7 = vmax.f32 %v250_v63, 0.0  ;;  %v285_v8 = vmax.f32 %v273_v2, 0.0  ;;  %v1292_v63 = vpop.permute.xlu2 %526 }
  0xa4   :  { %v290_v59 = vmax.f32 %v207_v55, 0.0  ;;  %v291_v60 = vmax.f32 %v230_v56, 0.0 }
  0xa6   :  { %421 = vmatpush.msrb.mxu0 %v290_v59  ;;  %444 = vmatpush.msrb.mxu1 %v291_v60 }
  0xa8   :  { %v252_v0 = vpop.f32.mrf.mxu2  ;;  %v275_v1 = vpop.f32.mrf.mxu3  ;;  %1002 = vmatmul.msk.f32.gmra.mxu2 %vm308_vm2, %v295_v50  ;;  %1004 = vmatmul.msk.f32.gmra.mxu3 %vm308_vm2, %v295_v50 }
  0xa9   :  { %v253_v3 = vadd.f32 %v252_v0, %v1186_v19  ;;  %v276_v4 = vadd.f32 %v275_v1, %v1186_v19  ;;  %422 = vmatpush.msrb.mxu0 %v282_v61  ;;  %445 = vmatpush.msrb.mxu1 %v283_v62 }
  0xaa   :  { %1005 = vmatmul.msk.f32.vlgmr.msrb.gmra.mxu0 %vm308_vm2, %v294_v37  ;;  %1007 = vmatmul.msk.f32.vlgmr.msrb.gmra.mxu1 %vm308_vm2, %v294_v37 }
  0xab   :  { %v292_v5 = vmax.f32 %v253_v3, 0.0  ;;  %v293_v6 = vmax.f32 %v276_v4, 0.0 }
  0xad   :  { %467 = vmatpush.msrb.mxu2 %v292_v5  ;;  %490 = vmatpush.msrb.mxu3 %v293_v6 }
  0xaf   :  { %468 = vmatpush.msrb.mxu2 %v284_v7  ;;  %491 = vmatpush.msrb.mxu3 %v285_v8 }
  0xb0   :  { %1009 = vmatmul.msk.f32.vlgmr.msrb.gmra.mxu2 %vm308_vm2, %v294_v37  ;;  %1011 = vmatmul.msk.f32.vlgmr.msrb.gmra.mxu3 %vm308_vm2, %v294_v37 }
  0xb2   :  { %1006 = vmatmul.msk.f32.gmra.mxu0 %vm308_vm2, %v295_v50  ;;  %1008 = vmatmul.msk.f32.gmra.mxu1 %vm308_vm2, %v295_v50 }
  0xb8   :  { %1010 = vmatmul.msk.f32.gmra.mxu2 %vm308_vm2, %v295_v50  ;;  %1012 = vmatmul.msk.f32.gmra.mxu3 %vm308_vm2, %v295_v50 }
  0xfc   :  { %v1294_v2 = vpop.permute.xlu2 %521 }
 0x116   :  { %v332_v10 = vpop.f32.mrf.mxu0  ;;  %v355_v11 = vpop.f32.mrf.mxu1 }
 0x117   :  { %v333_v13 = vadd.f32 %v332_v10, %v1236_v12  ;;  %v356_v14 = vadd.f32 %v355_v11, %v1236_v12 }
 0x119   :  { %v499_v21 = vmax.f32 %v333_v13, 0.0  ;;  %v500_v22 = vmax.f32 %v356_v14, 0.0  ;;  %v1303_v13 = vld [vmem:[%s1354_s7] sm:$0xff] }
 0x11e   :  { %v335_v15 = vpop.f32.mrf.mxu0  ;;  %v358_v16 = vpop.f32.mrf.mxu1 }
 0x11f   :  { %v336_v17 = vadd.f32 %v335_v15, %v1234_v9  ;;  %v359_v18 = vadd.f32 %v358_v16, %v1234_v9 }
 0x121   :  { %v507_v19 = vmax.f32 %v336_v17, 0.0  ;;  %v508_v20 = vmax.f32 %v359_v18, 0.0  ;;  %v736_v18 = vld [vmem:[%s1354_s7 + $0x8] sm:$0xff]  ;;  %s1079_s7 = smov [#allocation2]  }
 0x122   :  { %s959_s20 = sshll.u32 %s1079_s7, 4  ;;  %s960_s20 = int_to_ptr.vmem [resolvable:$true] %s959_s20 }
 0x123   :  { %v378_v23 = vpop.f32.mrf.mxu2  ;;  %v401_v24 = vpop.f32.mrf.mxu3  ;;  %549 = vmatpush.msra.mxu0 %v507_v19  ;;  %572 = vmatpush.msra.mxu1 %v508_v20 }
 0x124   :  { %v379_v28 = vadd.f32 %v378_v23, %v1236_v12  ;;  %v402_v33 = vadd.f32 %v401_v24, %v1236_v12 }
 0x125   :  { %550 = vmatpush.msra.mxu0 %v499_v21  ;;  %573 = vmatpush.msra.mxu1 %v500_v22 }
 0x126   :  { %1013 = vmatmul.msk.f32.vlgmr.msra.gmra.mxu0 %vm308_vm2, %v1245_v25  ;;  %1015 = vmatmul.msk.f32.vlgmr.msra.gmra.mxu1 %vm308_vm2, %v1245_v25  ;;  %v501_v38 = vmax.f32 %v379_v28, 0.0  ;;  %v502_v42 = vmax.f32 %v402_v33, 0.0 }
 0x127   :  { %v424_v26 = vpop.f32.mrf.mxu0  ;;  %v447_v27 = vpop.f32.mrf.mxu1 }
 0x128   :  { %v425_v39 = vadd.f32 %v424_v26, %v1236_v12  ;;  %v448_v43 = vadd.f32 %v447_v27, %v1236_v12 }
 0x12a   :  { %v503_v51 = vmax.f32 %v425_v39, 0.0  ;;  %v504_v52 = vmax.f32 %v448_v43, 0.0 }
 0x12b   :  { %v381_v29 = vpop.f32.mrf.mxu2  ;;  %v404_v30 = vpop.f32.mrf.mxu3 }
 0x12c   :  { %v382_v34 = vadd.f32 %v381_v29, %v1234_v9  ;;  %v405_v35 = vadd.f32 %v404_v30, %v1234_v9 }
 0x12e   :  { %v509_v36 = vmax.f32 %v382_v34, 0.0  ;;  %v510_v37 = vmax.f32 %v405_v35, 0.0  ;;  %1014 = vmatmul.msk.f32.gmra.mxu0 %vm308_vm2, %v516_v31  ;;  %1016 = vmatmul.msk.f32.gmra.mxu1 %vm308_vm2, %v516_v31 }
 0x12f   :  { %v427_v40 = vpop.f32.mrf.mxu0  ;;  %v450_v41 = vpop.f32.mrf.mxu1 }
 0x130   :  { %v428_v44 = vadd.f32 %v427_v40, %v1234_v9  ;;  %v451_v45 = vadd.f32 %v450_v41, %v1234_v9  ;;  %595 = vmatpush.msra.mxu2 %v509_v36  ;;  %618 = vmatpush.msra.mxu3 %v510_v37 }
 0x132   :  { %v511_v46 = vmax.f32 %v428_v44, 0.0  ;;  %v512_v47 = vmax.f32 %v451_v45, 0.0  ;;  %596 = vmatpush.msra.mxu2 %v501_v38  ;;  %619 = vmatpush.msra.mxu3 %v502_v42 }
 0x133   :  { %v470_v49 = vpop.f32.mrf.mxu2  ;;  %v493_v50 = vpop.f32.mrf.mxu3  ;;  %1017 = vmatmul.msk.f32.vlgmr.msra.gmra.mxu2 %vm308_vm2, %v1245_v25  ;;  %1019 = vmatmul.msk.f32.vlgmr.msra.gmra.mxu3 %vm308_vm2, %v1245_v25 }
 0x134   :  { %641 = vmatpush.msrb.mxu0 %v511_v46  ;;  %664 = vmatpush.msrb.mxu1 %v512_v47  ;;  %v471_v55 = vadd.f32 %v470_v49, %v1236_v12  ;;  %v494_v56 = vadd.f32 %v493_v50, %v1236_v12 }
 0x136   :  { %642 = vmatpush.msrb.mxu0 %v503_v51  ;;  %665 = vmatpush.msrb.mxu1 %v504_v52  ;;  %v505_v61 = vmax.f32 %v471_v55, 0.0  ;;  %v506_v62 = vmax.f32 %v494_v56, 0.0  ;;  %v742_v51 = vpop.permute.xlu0 %741  ;;  %v747_v56 = vpop.permute.xlu1 %746 }
 0x137   :  { %1021 = vmatmul.msk.f32.vlgmr.msrb.gmra.mxu0 %vm308_vm2, %v1245_v25  ;;  %1023 = vmatmul.msk.f32.vlgmr.msrb.gmra.mxu1 %vm308_vm2, %v1245_v25 }
 0x13b   :  { %v473_v53 = vpop.f32.mrf.mxu2  ;;  %v496_v54 = vpop.f32.mrf.mxu3  ;;  %1018 = vmatmul.msk.f32.gmra.mxu2 %vm308_vm2, %v516_v31  ;;  %1020 = vmatmul.msk.f32.gmra.mxu3 %vm308_vm2, %v516_v31 }
 0x13c   :  { %v474_v57 = vadd.f32 %v473_v53, %v1234_v9  ;;  %v497_v58 = vadd.f32 %v496_v54, %v1234_v9 }
 0x13e   :  { %v513_v59 = vmax.f32 %v474_v57, 0.0  ;;  %v514_v60 = vmax.f32 %v497_v58, 0.0 }
 0x13f   :  { %1022 = vmatmul.msk.f32.gmra.mxu0 %vm308_vm2, %v516_v31  ;;  %1024 = vmatmul.msk.f32.gmra.mxu1 %vm308_vm2, %v516_v31 }
 0x140   :  { %687 = vmatpush.msrb.mxu2 %v513_v59  ;;  %710 = vmatpush.msrb.mxu3 %v514_v60 }
 0x142   :  { %688 = vmatpush.msrb.mxu2 %v505_v61  ;;  %711 = vmatpush.msrb.mxu3 %v506_v62 }
 0x143   :  { %1025 = vmatmul.msk.f32.vlgmr.msrb.gmra.mxu2 %vm308_vm2, %v1245_v25  ;;  %1027 = vmatmul.msk.f32.vlgmr.msrb.gmra.mxu3 %vm308_vm2, %v1245_v25 }
 0x14b   :  { %1026 = vmatmul.msk.f32.gmra.mxu2 %vm308_vm2, %v516_v31  ;;  %1028 = vmatmul.msk.f32.gmra.mxu3 %vm308_vm2, %v516_v31 }
 0x1a3   :  { %v552_v0 = vpop.f32.mrf.mxu0  ;;  %v575_v1 = vpop.f32.mrf.mxu1 }
 0x1a4   :  { %v553_v3 = vadd.f32 %v552_v0, %v1294_v2  ;;  %v576_v4 = vadd.f32 %v575_v1, %v1294_v2 }
 0x1a6   :  { %v719_v11 = vmax.f32 %v553_v3, 0.0  ;;  %v720_v12 = vmax.f32 %v576_v4, 0.0 }
 0x1ab   :  { %v555_v5 = vpop.f32.mrf.mxu0  ;;  %v578_v6 = vpop.f32.mrf.mxu1 }
 0x1ac   :  { %v556_v7 = vadd.f32 %v555_v5, %v1292_v63  ;;  %v579_v8 = vadd.f32 %v578_v6, %v1292_v63 }
 0x1ae   :  { %v727_v9 = vmax.f32 %v556_v7, 0.0  ;;  %v728_v10 = vmax.f32 %v579_v8, 0.0 }
 0x1b0   :  { %769 = vmatpush.msra.mxu0 %v727_v9  ;;  %792 = vmatpush.msra.mxu1 %v728_v10 }
 0x1b2   :  { %770 = vmatpush.msra.mxu0 %v719_v11  ;;  %793 = vmatpush.msra.mxu1 %v720_v12 }
 0x1b3   :  { %1029 = vmatmul.msk.f32.vlgmr.msra.gmra.mxu0 %vm308_vm2, %v1303_v13  ;;  %1031 = vmatmul.msk.f32.vlgmr.msra.gmra.mxu1 %vm308_vm2, %v1303_v13 }
 0x1b4   :  { %v644_v14 = vpop.f32.mrf.mxu0  ;;  %v667_v15 = vpop.f32.mrf.mxu1 }
 0x1b5   :  { %v645_v23 = vadd.f32 %v644_v14, %v1294_v2  ;;  %v668_v24 = vadd.f32 %v667_v15, %v1294_v2 }
 0x1b6   :  { %v598_v16 = vpop.f32.mrf.mxu2  ;;  %v621_v17 = vpop.f32.mrf.mxu3 }
 0x1b7   :  { %v599_v31 = vadd.f32 %v598_v16, %v1294_v2  ;;  %v622_v32 = vadd.f32 %v621_v17, %v1294_v2  ;;  %v723_v35 = vmax.f32 %v645_v23, 0.0  ;;  %v724_v36 = vmax.f32 %v668_v24, 0.0 }
 0x1b9   :  { %v721_v37 = vmax.f32 %v599_v31, 0.0  ;;  %v722_v38 = vmax.f32 %v622_v32, 0.0 }
 0x1bb   :  { %1030 = vmatmul.msk.f32.gmra.mxu0 %vm308_vm2, %v736_v18  ;;  %1032 = vmatmul.msk.f32.gmra.mxu1 %vm308_vm2, %v736_v18 }
 0x1bc   :  { %v647_v19 = vpop.f32.mrf.mxu0  ;;  %v670_v20 = vpop.f32.mrf.mxu1 }
 0x1bd   :  { %v648_v21 = vadd.f32 %v647_v19, %v1292_v63  ;;  %v671_v22 = vadd.f32 %v670_v20, %v1292_v63 }
 0x1be   :  { %v601_v25 = vpop.f32.mrf.mxu2  ;;  %v624_v26 = vpop.f32.mrf.mxu3 }
 0x1bf   :  { %v731_v27 = vmax.f32 %v648_v21, 0.0  ;;  %v732_v28 = vmax.f32 %v671_v22, 0.0  ;;  %v602_v29 = vadd.f32 %v601_v25, %v1292_v63  ;;  %v625_v30 = vadd.f32 %v624_v26, %v1292_v63 }
 0x1c1   :  { %v729_v33 = vmax.f32 %v602_v29, 0.0  ;;  %v730_v34 = vmax.f32 %v625_v30, 0.0  ;;  %861 = vmatpush.msrb.mxu0 %v731_v27  ;;  %884 = vmatpush.msrb.mxu1 %v732_v28 }
 0x1c3   :  { %815 = vmatpush.msra.mxu2 %v729_v33  ;;  %838 = vmatpush.msra.mxu3 %v730_v34 }
 0x1c4   :  { %862 = vmatpush.msrb.mxu0 %v723_v35  ;;  %885 = vmatpush.msrb.mxu1 %v724_v36 }
 0x1c5   :  { %1037 = vmatmul.msk.f32.vlgmr.msrb.gmra.mxu0 %vm308_vm2, %v1303_v13  ;;  %1039 = vmatmul.msk.f32.vlgmr.msrb.gmra.mxu1 %vm308_vm2, %v1303_v13 }
 0x1c6   :  { %816 = vmatpush.msra.mxu2 %v721_v37  ;;  %839 = vmatpush.msra.mxu3 %v722_v38  ;;  %v690_v39 = vpop.f32.mrf.mxu2  ;;  %v713_v40 = vpop.f32.mrf.mxu3 }
 0x1c7   :  { %1033 = vmatmul.msk.f32.vlgmr.msra.gmra.mxu2 %vm308_vm2, %v1303_v13  ;;  %1035 = vmatmul.msk.f32.vlgmr.msra.gmra.mxu3 %vm308_vm2, %v1303_v13  ;;  %v691_v41 = vadd.f32 %v690_v39, %v1294_v2  ;;  %v714_v44 = vadd.f32 %v713_v40, %v1294_v2 }
 0x1c9   :  { %v725_v49 = vmax.f32 %v691_v41, 0.0  ;;  %v726_v50 = vmax.f32 %v714_v44, 0.0 }
 0x1cd   :  { %1038 = vmatmul.msk.f32.gmra.mxu0 %vm308_vm2, %v736_v18  ;;  %1040 = vmatmul.msk.f32.gmra.mxu1 %vm308_vm2, %v736_v18 }
 0x1ce   :  { %v693_v42 = vpop.f32.mrf.mxu2  ;;  %v716_v43 = vpop.f32.mrf.mxu3 }
 0x1cf   :  { %v694_v45 = vadd.f32 %v693_v42, %v1292_v63  ;;  %v717_v46 = vadd.f32 %v716_v43, %v1292_v63  ;;  %1034 = vmatmul.msk.f32.gmra.mxu2 %vm308_vm2, %v736_v18  ;;  %1036 = vmatmul.msk.f32.gmra.mxu3 %vm308_vm2, %v736_v18 }
 0x1d1   :  { %v733_v47 = vmax.f32 %v694_v45, 0.0  ;;  %v734_v48 = vmax.f32 %v717_v46, 0.0 }
 0x1d3   :  { %907 = vmatpush.msrb.mxu2 %v733_v47  ;;  %930 = vmatpush.msrb.mxu3 %v734_v48 }
 0x1d5   :  { %908 = vmatpush.msrb.mxu2 %v725_v49  ;;  %931 = vmatpush.msrb.mxu3 %v726_v50 }
 0x1d7   :  { %1041 = vmatmul.msk.f32.vlgmr.msrb.gmra.mxu2 %vm308_vm2, %v1303_v13  ;;  %1043 = vmatmul.msk.f32.vlgmr.msrb.gmra.mxu3 %vm308_vm2, %v1303_v13 }
 0x1df   :  { %1042 = vmatmul.msk.f32.gmra.mxu2 %vm308_vm2, %v736_v18  ;;  %1044 = vmatmul.msk.f32.gmra.mxu3 %vm308_vm2, %v736_v18 }
 0x230   :  { %v772_v52 = vpop.f32.mrf.mxu0  ;;  %v795_v53 = vpop.f32.mrf.mxu1 }
 0x231   :  { %v773_v54 = vadd.f32 %v772_v52, %v742_v51  ;;  %v796_v55 = vadd.f32 %v795_v53, %v742_v51 }
 0x233   :  { %939 = vst [vmem:[#allocation2] sm:$0xff] %v773_v54 }
 0x234   :  { %940 = vst [vmem:[#allocation2 + $0x8] sm:$0xff] %v796_v55 }
 0x238   :  { %v775_v57 = vpop.f32.mrf.mxu0  ;;  %v798_v58 = vpop.f32.mrf.mxu1 }
 0x239   :  { %v776_v59 = vadd.f32 %v775_v57, %v747_v56  ;;  %v799_v60 = vadd.f32 %v798_v58, %v747_v56 }
 0x23b   :  { %947 = vst [vmem:[#allocation2 + $0x40] sm:$0xff] %v776_v59 }
 0x23c   :  { %948 = vst [vmem:[#allocation2 + $0x48] sm:$0xff] %v799_v60 }
 0x242   :  { %v864_v61 = vpop.f32.mrf.mxu0  ;;  %v887_v62 = vpop.f32.mrf.mxu1 }
 0x243   :  { %v865_v63 = vadd.f32 %v864_v61, %v742_v51  ;;  %v888_v0 = vadd.f32 %v887_v62, %v742_v51 }
 0x245   :  { %943 = vst [vmem:[#allocation2 + $0x20] sm:$0xff] %v865_v63 }
 0x246   :  { %944 = vst [vmem:[#allocation2 + $0x28] sm:$0xff] %v888_v0 }
 0x24a   :  { %v818_v1 = vpop.f32.mrf.mxu2  ;;  %v841_v2 = vpop.f32.mrf.mxu3 }
 0x24b   :  { %v819_v3 = vadd.f32 %v818_v1, %v742_v51  ;;  %v842_v4 = vadd.f32 %v841_v2, %v742_v51  ;;  %v867_v5 = vpop.f32.mrf.mxu0  ;;  %v890_v6 = vpop.f32.mrf.mxu1 }
 0x24c   :  { %v868_v7 = vadd.f32 %v867_v5, %v747_v56  ;;  %v891_v8 = vadd.f32 %v890_v6, %v747_v56 }
 0x24d   :  { %941 = vst [vmem:[#allocation2 + $0x10] sm:$0xff] %v819_v3 }
 0x24e   :  { %942 = vst [vmem:[#allocation2 + $0x18] sm:$0xff] %v842_v4 }
 0x24f   :  { %951 = vst [vmem:[#allocation2 + $0x60] sm:$0xff] %v868_v7 }
 0x250   :  { %952 = vst [vmem:[#allocation2 + $0x68] sm:$0xff] %v891_v8 }
 0x252   :  { %v821_v9 = vpop.f32.mrf.mxu2  ;;  %v844_v10 = vpop.f32.mrf.mxu3 }
 0x253   :  { %v822_v11 = vadd.f32 %v821_v9, %v747_v56  ;;  %v845_v12 = vadd.f32 %v844_v10, %v747_v56 }
 0x255   :  { %949 = vst [vmem:[#allocation2 + $0x50] sm:$0xff] %v822_v11 }
 0x256   :  { %950 = vst [vmem:[#allocation2 + $0x58] sm:$0xff] %v845_v12 }
 0x25a   :  { %v910_v13 = vpop.f32.mrf.mxu2  ;;  %v933_v14 = vpop.f32.mrf.mxu3 }
 0x25b   :  { %v911_v15 = vadd.f32 %v910_v13, %v742_v51  ;;  %v934_v16 = vadd.f32 %v933_v14, %v742_v51 }
 0x25d   :  { %945 = vst [vmem:[#allocation2 + $0x30] sm:$0xff] %v911_v15 }
 0x25e   :  { %946 = vst [vmem:[#allocation2 + $0x38] sm:$0xff] %v934_v16 }
 0x262   :  { %v913_v17 = vpop.f32.mrf.mxu2  ;;  %v936_v18 = vpop.f32.mrf.mxu3 }
 0x263   :  { %v914_v19 = vadd.f32 %v913_v17, %v747_v56  ;;  %v937_v20 = vadd.f32 %v936_v18, %v747_v56 }
 0x265   :  { %953 = vst [vmem:[#allocation2 + $0x70] sm:$0xff] %v914_v19 }
 0x266   :  { %954 = vst [vmem:[#allocation2 + $0x78] sm:$0xff] %v937_v20 }
 0x267   :  { %967 = dma.vmem_to_hbm [thread:$0]  %s960_s20, 2048, %s962_s2, [#allocation3], %s1080_s22, %s1080_s22, %s1081_s23  }
 0x268   :  { %1076 = dma.done.wait [#allocation3], 2048  }
 0x269   :  { %1077 = vsyncadd [#allocation3], 4294965248 }
 0x26a   :  { %972 = vsyncpa [#allocation3], 1 }

</bundles_post_ra>
